<compile_context>
chip_gen: v5e
topology: v5e:2x2
jax: 0.10.0
libtpu: 0.0.40
codegen_flags: <defaults>
</compile_context>

<pallas_src>
import math

import jax
import jax.numpy as jnp
from jax.experimental import pallas as pl
from jax.experimental.pallas import tpu as pltpu

_LANE = 128


def _copy_kernel(x_ref, o_ref):
    # Flatten has no arithmetic; the kernel body is a full-tile streaming copy.
    o_ref[...] = x_ref[...]


def _sublane(dtype) -> int:
    # Rows per vreg: 8 for 4-byte dtypes, 16 for 2-byte, 32 for 1-byte.
    return {4: 8, 2: 16, 1: 32}.get(jnp.dtype(dtype).itemsize, 8)


def _round_down(x: int, m: int) -> int:
    return (x // m) * m


def _round_up(x: int, m: int) -> int:
    return -(-x // m) * m


def _block_budget():
    """(target_block_bytes, vmem_limit_bytes), sized per TPU generation.

    v5e/v6e: 128 MiB physical VMEM -> 8 MiB blocks, 64 MiB scoped limit
             (fewer grid steps; amortizes the ~0.35 us/step overhead).
    v7x:     64 MiB VMEM per TensorCore -> keep 4 MiB blocks / 32 MiB limit
             (4 * block_bytes of double-buffering must stay well under 64 MiB).
    The conservative default is safe on every generation if the query fails.
    """
    target, limit = 4 * 1024 * 1024, 32 * 1024 * 1024
    try:
        cap = getattr(pltpu.get_tpu_info(), "vmem_capacity_bytes", 0)
        if cap >= 128 * 1024 * 1024:
            target, limit = 8 * 1024 * 1024, 64 * 1024 * 1024
    except Exception:
        pass
    return target, limit


def _pallas_copy_2d(x2d: jax.Array) -> jax.Array:
    """Lane/sublane-dense streaming copy of a (rows, lane) slab."""
    rows, lane = x2d.shape
    itemsize = jnp.dtype(x2d.dtype).itemsize
    sub = _sublane(x2d.dtype)
    target_block_bytes, vmem_limit = _block_budget()

    if rows <= sub:
        # Tiny slab: one full-extent block (always a legal block shape).
        rows_per_block = rows
    else:
        # Largest sublane-aligned block within the per-generation byte budget...
        rows_per_block = max(
            sub, _round_down(target_block_bytes // (lane * itemsize), sub)
        )
        # ...but never fewer than 2 grid steps, so "parallel" semantics let
        # v7x's two TensorCores both participate in the copy.
        half = _round_up(-(-rows // 2), sub)
        rows_per_block = min(rows_per_block, half, rows)

    grid = (pl.cdiv(rows, rows_per_block),)
    block_shape = (rows_per_block, lane)

    return pl.pallas_call(
        _copy_kernel,
        out_shape=jax.ShapeDtypeStruct(x2d.shape, x2d.dtype),
        grid_spec=pltpu.PrefetchScalarGridSpec(
            num_scalar_prefetch=0,
            grid=grid,
            in_specs=[pl.BlockSpec(block_shape, lambda i: (i, 0))],
            out_specs=pl.BlockSpec(block_shape, lambda i: (i, 0)),
        ),
        compiler_params=pltpu.CompilerParams(
            dimension_semantics=("parallel",),
            vmem_limit_bytes=vmem_limit,
        ),
    )(x2d)


def _pallas_copy_tail(tail1d: jax.Array) -> jax.Array:
    """Copy a short (<128 element) tail with a single full-extent block."""
    t = tail1d.shape[0]
    out = pl.pallas_call(
        _copy_kernel,
        out_shape=jax.ShapeDtypeStruct((1, t), tail1d.dtype),
        grid_spec=pltpu.PrefetchScalarGridSpec(
            num_scalar_prefetch=0,
            grid=(1,),
            in_specs=[pl.BlockSpec((1, t), lambda i: (0, 0))],
            out_specs=pl.BlockSpec((1, t), lambda i: (0, 0)),
        ),
    )(jnp.reshape(tail1d, (1, t)))
    return jnp.reshape(out, (t,))


def flatten(x: jax.Array, *, materialize: bool = False) -> jax.Array:
    """Pallas equivalent of torch Flatten: (N, d1, d2, ...) -> (N, prod(d_i)).

    By default this is a metadata-only reshape (exactly what .view(N, -1) is
    on a contiguous tensor) — no kernel, no HBM traffic. Pass
    materialize=True to force a fresh buffer via the Pallas streaming copy.
    """
    n = x.shape[0]
    flat = math.prod(x.shape[1:]) if x.ndim > 1 else 1

    if not materialize:
        return jnp.reshape(x, (n, flat))

    total = n * flat
    flat1d = jnp.reshape(x, (total,))  # row-major collapse, metadata only

    # Prefer a lane-dense (rows, lane) view of the whole tensor so every store
    # is an unmasked full-vreg vst.
    lane = next((c for c in (2048, 1024, 512, 256, _LANE) if total % c == 0), None)
    if lane is not None:
        out1d = jnp.reshape(
            _pallas_copy_2d(jnp.reshape(flat1d, (total // lane, lane))), (total,)
        )
    else:
        # Non-multiple-of-128 total: lane-dense prefix + tiny (<128 elem) tail.
        main = _round_down(total, _LANE)
        parts = []
        if main:
            parts.append(
                jnp.reshape(
                    _pallas_copy_2d(jnp.reshape(flat1d[:main], (main // _LANE, _LANE))),
                    (main,),
                )
            )
        if total - main:
            parts.append(_pallas_copy_tail(flat1d[main:]))
        out1d = parts[0] if len(parts) == 1 else jnp.concatenate(parts)

    return jnp.reshape(out1d, (n, flat))


if __name__ == "__main__":
    key = jax.random.PRNGKey(0)
    # Small NCHW input: batch=2, channels=4, spatial=16x16 -> flat dim 1024.
    x = jax.random.normal(key, (2, 4, 16, 16), dtype=jnp.float32)

    y_fast = flatten(x)                    # metadata-only fast path (no kernel)
    y_kern = flatten(x, materialize=True)  # Pallas streaming-copy path
    jax.block_until_ready((y_fast, y_kern))

    # Reference: row-major flatten, identical to torch's x.view(N, -1).
    y_ref = jnp.reshape(x, (x.shape[0], -1))

    assert y_fast.shape == (2, 4 * 16 * 16), y_fast.shape
    assert y_kern.shape == (2, 4 * 16 * 16), y_kern.shape
    assert y_kern.dtype == x.dtype
    assert bool(jnp.array_equal(y_fast, y_ref))
    assert bool(jnp.array_equal(y_kern, y_ref))

    # Exercise the non-multiple-of-128 fallback (prefix + tail path).
    x_odd = jax.random.normal(jax.random.PRNGKey(1), (2, 3, 5, 7), dtype=jnp.float32)
    y_odd = flatten(x_odd, materialize=True)
    jax.block_until_ready(y_odd)
    assert bool(jnp.array_equal(y_odd, jnp.reshape(x_odd, (2, -1))))

    print("KERNEL_OK")
</pallas_src>

<mosaic_0001>
module attributes {stable_mosaic.version = 11 : i64} {
  func.func @_copy_kernel(%arg0: i32, %arg1: memref<1x2048xf32, #tpu.memory_space<vmem>>, %arg2: memref<1x2048xf32, #tpu.memory_space<vmem>>) attributes {dimension_semantics = [#tpu.dimension_semantics<parallel>], iteration_bounds = array<i64: 1>, scalar_prefetch = 0 : i64, scratch_operands = 0 : i64, tpu.core_type = #tpu.core_type<tc>, window_params = [{transform_indices = @transform_0, window_bounds = array<i64: 1, 2048>}, {transform_indices = @transform_1, window_bounds = array<i64: 1, 2048>}]} {
    %c0 = arith.constant 0 : index
    %c0_0 = arith.constant 0 : index
    %0 = vector.load %arg1[%c0, %c0_0] : memref<1x2048xf32, #tpu.memory_space<vmem>>, vector<1x2048xf32>
    %c0_1 = arith.constant 0 : index
    %c0_2 = arith.constant 0 : index
    %1 = vector.load %arg2[%c0_1, %c0_2] : memref<1x2048xf32, #tpu.memory_space<vmem>>, vector<1x2048xf32>
    tpu.vector_store %arg2[%c0_1, %c0_2], %0 {strides = array<i32>} : memref<1x2048xf32, #tpu.memory_space<vmem>>, vector<1x2048xf32>,
    return
  }
  func.func @transform_0(%arg0: i32) -> (i32, i32) {
    %c0_i32 = arith.constant 0 : i32
    %c0_i32_0 = arith.constant 0 : i32
    return %arg0, %c0_i32 : i32, i32
  }
  func.func @transform_1(%arg0: i32) -> (i32, i32) {
    %c0_i32 = arith.constant 0 : i32
    %c0_i32_0 = arith.constant 0 : i32
    return %arg0, %c0_i32 : i32, i32
  }
}

</mosaic_0001>

<bundles_post_ra>
// kernel: tpu_custom_call.1
= control target key start
LH: loop header
LB: loop body
LE: loop exit
PB: predicated region body
PF: predicated region fallthrough
CT: control target
= control target key end

     0   :  { %6 = vsyncpa [#allocation3], 0  ;;  %s116_s0 = inlined_call_operand.hbm [shape: f32[1,2048], index: 0, kind: input, shape index: {}]   ;;  %s117_s1 = inlined_call_operand.hbm [shape: f32[1,2048], index: 1, kind: output, shape index: {}]  }
   0x1   :  { %7 = vsyncpa [#allocation4], 0  ;;  %s13_s8 = sshll.u32 %s116_s0, 4  ;;  %s98_s9 = smov [#allocation2]   ;;  %s14_s8 = int_to_ptr.hbm [resolvable:$true] %s13_s8 }
   0x2   :  { %s15_s10 = sshll.u32 %s98_s9, 4  ;;  %s16_s10 = int_to_ptr.vmem [resolvable:$true] %s15_s10 }
   0x3   :  { %18 = dma.hbm_to_vmem [thread:$0]  %s14_s8, 256, %s16_s10, [#allocation3]  }
   0x4   :  { %94 = dma.done.wait [#allocation3], 256  }
   0x5   :  { %95 = vsyncadd [#allocation3], 4294967040  ;;  %s99_s11 = smov [#allocation5]   ;;  %s34_s15 = sshll.u32 %s117_s1, 4  ;;  %v23_v0 = vld [vmem:[#allocation2] sm:$0xff]  ;;  %v24_v1 = vld [vmem:[#allocation2 + $0x8] sm:$0xff]  ;;  %s35_s15 = int_to_ptr.hbm [resolvable:$true] %s34_s15 }
   0x6   :  { %s32_s12 = sshll.u32 %s99_s11, 4  ;;  %25 = vst [vmem:[#allocation5] sm:$0xff] %v23_v0  ;;  %s33_s12 = int_to_ptr.vmem [resolvable:$true] %s32_s12 }
   0x7   :  { %26 = vst [vmem:[#allocation5 + $0x8] sm:$0xff] %v24_v1 }
   0x8   :  { %37 = dma.vmem_to_hbm [thread:$0]  %s33_s12, 256, %s35_s15, [#allocation4]  }
   0x9   :  { %96 = dma.done.wait [#allocation4], 256  }
   0xa   :  { %97 = vsyncadd [#allocation4], 4294967040 }
   0xb   :  { %42 = vsyncpa [#allocation3], 1 }
   0xc   :  { %43 = vsyncpa [#allocation4], 1 }

</bundles_post_ra>
